<compile_context>
chip_gen: v7x
topology: tpu7x:2x2x1
jax: 0.10.0
libtpu: 0.0.40
codegen_flags: <defaults>
</compile_context>

<pallas_src>
import functools

import numpy as np
import jax
import jax.numpy as jnp
from jax.experimental import pallas as pl
from jax.experimental.pallas import tpu as pltpu

# Gray-Scott constants (defaults of GrayScott_Grad_2). NOTE: the PyTorch code
# constructs GrayScott_Grad_2() with its *default* N=63 regardless of grid_size,
# so h = 1/62 is kept even for small test grids, matching the reference exactly.
DA = 0.00025
DS = 0.0005
MU = 0.065
RHO = 0.04
_H = 1.0 / (63 - 1)
_INV_H2 = 1.0 / (_H * _H)


# ---------------------------------------------------------------------------
# In-kernel flat (lane-dense) replicate-padded Laplacian
# ---------------------------------------------------------------------------
def _flat_replicate_laplacian(u, col_ids, G):
    """5-point Laplacian with replicate ('edge') padding on row-major-flattened
    data.  u: (R, G*G) where flat index = i*G + j.  col_ids: (1, G*G) int32.

    Each neighbor is produced with pltpu.roll; a tag array is rolled with the
    same call and a rolled-in value is accepted only if |tag difference| equals
    the expected row/column adjacency, otherwise the center value is used
    (exactly replicate padding).  Correct under either roll sign convention.
    """
    GG = G * G
    ax = u.ndim - 1
    flat_ids = jax.lax.broadcasted_iota(jnp.int32, (1, GG), 1)

    def shifted(tag, shift, adjacency):
        un = pltpu.roll(u, shift, ax)
        tn = pltpu.roll(tag, shift, 1)
        d = tn - tag
        valid = (d == adjacency) | (d == -adjacency)
        return jnp.where(valid, un, u)

    up = shifted(flat_ids, G, G)          # one vertical neighbor (replicate at edge)
    dn = shifted(flat_ids, GG - G, G)     # the other vertical neighbor
    lf = shifted(col_ids, 1, 1)           # one horizontal neighbor
    rt = shifted(col_ids, GG - 1, 1)      # the other horizontal neighbor
    return (4.0 * u - up - dn - lf - rt) * _INV_H2


# ---------------------------------------------------------------------------
# Fused kernel: Gray-Scott gradient + branch_1 * branch_2 + trunk matmul
# ---------------------------------------------------------------------------
def deeponet_kernel(col_ref, x_ref,
                    w1_ref, b1_ref, w2_ref, b2_ref,
                    w3_ref, b3_ref, w4_ref, b4_ref,
                    trunk_ref, out_ref, *, G):
    GG = G * G
    u = x_ref[0]                        # (2, GG): row 0 = A, row 1 = S
    col_ids = col_ref[...]              # (1, GG) int32: flat index % G

    lap = _flat_replicate_laplacian(u, col_ids, G)   # (2, GG)

    A, S = u[0:1, :], u[1:2, :]
    lapA, lapS = lap[0:1, :], lap[1:2, :]
    SA2 = S * A * A
    FA = DA * lapA - SA2 + (MU + RHO) * A
    FS = DS * lapS + SA2 - RHO * (1.0 - S)

    xf = jnp.concatenate([A, S], axis=1)     # (1, 2*GG) == NCHW flatten of A_S
    gf = jnp.concatenate([FA, FS], axis=1)   # (1, 2*GG) == NCHW flatten of grad

    # branch_1(A_S): tanh(xf @ W1 + b1) @ W2 + b2
    h1 = jnp.tanh(jnp.dot(xf, w1_ref[...],
                          preferred_element_type=jnp.float32) + b1_ref[...])
    br1 = jnp.dot(h1, w2_ref[...],
                  preferred_element_type=jnp.float32) + b2_ref[...]
    # branch_2(grad): (gf @ W3 + b3) @ W4 + b4   (if_linear=True -> no tanh)
    h2 = jnp.dot(gf, w3_ref[...],
                 preferred_element_type=jnp.float32) + b3_ref[...]
    br2 = jnp.dot(h2, w4_ref[...],
                  preferred_element_type=jnp.float32) + b4_ref[...]

    branch = br1 * br2                       # (1, F)
    out = jnp.dot(branch, trunk_ref[...],
                  preferred_element_type=jnp.float32)   # (1, 2*GG)

    out_ref[:, 0, :] = out[:, :GG]
    out_ref[:, 1, :] = out[:, GG:]


def _full2d(a):
    return pl.BlockSpec(a.shape, lambda b: (0, 0))


def deeponet_pod_2_forward(x_branch, params):
    B, _, G, _ = x_branch.shape
    GG = G * G
    D = 2 * GG

    x3 = x_branch.reshape(B, 2, GG)                       # free row-major reshape
    col_ids = jnp.asarray(np.arange(GG) % G, jnp.int32).reshape(1, GG)

    w1, b1, w2, b2 = params["w1"], params["b1"], params["w2"], params["b2"]
    w3, b3, w4, b4 = params["w3"], params["b3"], params["w4"], params["b4"]
    trunk = params["trunk"]
    H = w1.shape[1]
    F_ = w2.shape[1]

    operands = (col_ids, x3, w1, b1, w2, b2, w3, b3, w4, b4, trunk)
    bytes_accessed = int(sum(int(a.size) * a.dtype.itemsize for a in operands)
                         + B * 2 * GG * 4)
    flops = int(B * (4 * D * H + 4 * H * F_ + 2 * F_ * D) + B * 2 * GG * 12)
    cost = pl.CostEstimate(flops=flops, transcendentals=int(B * H),
                           bytes_accessed=bytes_accessed)

    out3 = pl.pallas_call(
        functools.partial(deeponet_kernel, G=G),
        out_shape=jax.ShapeDtypeStruct((B, 2, GG), jnp.float32),
        grid=(B,),
        in_specs=[
            _full2d(col_ids),
            pl.BlockSpec((1, 2, GG), lambda b: (b, 0, 0)),
            _full2d(w1), _full2d(b1), _full2d(w2), _full2d(b2),
            _full2d(w3), _full2d(b3), _full2d(w4), _full2d(b4),
            _full2d(trunk),
        ],
        out_specs=pl.BlockSpec((1, 2, GG), lambda b: (b, 0, 0)),
        compiler_params=pltpu.CompilerParams(
            dimension_semantics=("parallel",)),
        cost_estimate=cost,
    )(*operands)
    return out3.reshape(B, 2, G, G)


# ---------------------------------------------------------------------------
# Deterministic parameter init and pure-JAX reference
# ---------------------------------------------------------------------------
def init_params(key, grid_size, branch_features, hidden):
    D = 2 * grid_size * grid_size
    ks = jax.random.split(key, 9)
    s = 0.1
    params = dict(
        w1=s * jax.random.normal(ks[0], (D, hidden), jnp.float32),
        b1=s * jax.random.normal(ks[1], (1, hidden), jnp.float32),
        w2=s * jax.random.normal(ks[2], (hidden, branch_features), jnp.float32),
        b2=s * jax.random.normal(ks[3], (1, branch_features), jnp.float32),
        w3=s * jax.random.normal(ks[4], (D, hidden), jnp.float32),
        b3=s * jax.random.normal(ks[5], (1, hidden), jnp.float32),
        w4=s * jax.random.normal(ks[6], (hidden, branch_features), jnp.float32),
        b4=s * jax.random.normal(ks[7], (1, branch_features), jnp.float32),
    )
    # trunk = V[:branch_features].view(branch_features, -1), V: (F, 2, G, G)
    V = jax.random.normal(ks[8], (branch_features, 2, grid_size, grid_size),
                          jnp.float32)
    params["trunk"] = V.reshape(branch_features, -1)
    return params


def _replicate_laplacian(u):
    """Reference 5-point Laplacian with replicate padding; u: (B, G, G)."""
    up = jnp.concatenate([u[:, :1, :], u[:, :-1, :]], axis=1)
    down = jnp.concatenate([u[:, 1:, :], u[:, -1:, :]], axis=1)
    left = jnp.concatenate([u[:, :, :1], u[:, :, :-1]], axis=2)
    right = jnp.concatenate([u[:, :, 1:], u[:, :, -1:]], axis=2)
    return (4.0 * u - up - down - left - right) * _INV_H2


def reference_forward(x, params):
    B, _, G, _ = x.shape
    A = x[:, 0]
    S = x[:, 1]
    lap_A = _replicate_laplacian(A)
    lap_S = _replicate_laplacian(S)
    SA2 = S * A * A
    FA = DA * lap_A - SA2 + (MU + RHO) * A
    FS = DS * lap_S + SA2 - RHO * (1.0 - S)
    grad = jnp.stack([FA, FS], axis=1)
    xf = x.reshape(B, -1)
    gf = grad.reshape(B, -1)
    hi = jax.lax.Precision.HIGHEST
    h1 = jnp.tanh(jnp.dot(xf, params["w1"], precision=hi) + params["b1"])
    br1 = jnp.dot(h1, params["w2"], precision=hi) + params["b2"]
    h2 = jnp.dot(gf, params["w3"], precision=hi) + params["b3"]
    br2 = jnp.dot(h2, params["w4"], precision=hi) + params["b4"]
    out = jnp.dot(br1 * br2, params["trunk"], precision=hi)
    return out.reshape(B, 2, G, G)


if __name__ == "__main__":
    B = 2
    GRID = 16
    BRANCH_FEATURES = 32
    HIDDEN = 32

    key = jax.random.PRNGKey(0)
    k_x, k_p = jax.random.split(key)
    x_branch = jax.random.normal(k_x, (B, 2, GRID, GRID), jnp.float32)
    params = init_params(k_p, GRID, BRANCH_FEATURES, HIDDEN)

    out = jax.jit(deeponet_pod_2_forward)(x_branch, params)
    out = jax.block_until_ready(out)

    ref = reference_forward(x_branch, params)
    assert out.shape == (B, 2, GRID, GRID), out.shape
    max_err = float(jnp.max(jnp.abs(out - ref)))
    assert jnp.allclose(out, ref, rtol=1e-2, atol=1e-2), max_err

    print("KERNEL_OK")
</pallas_src>

<mosaic_0001>
module attributes {stable_mosaic.version = 11 : i64} {
  func.func @deeponet_kernel(%arg0: i32, %arg1: memref<1x256xi32, #tpu.memory_space<vmem>>, %arg2: memref<1x2x256xf32, #tpu.memory_space<vmem>>, %arg3: memref<512x32xf32, #tpu.memory_space<vmem>>, %arg4: memref<1x32xf32, #tpu.memory_space<vmem>>, %arg5: memref<32x32xf32, #tpu.memory_space<vmem>>, %arg6: memref<1x32xf32, #tpu.memory_space<vmem>>, %arg7: memref<512x32xf32, #tpu.memory_space<vmem>>, %arg8: memref<1x32xf32, #tpu.memory_space<vmem>>, %arg9: memref<32x32xf32, #tpu.memory_space<vmem>>, %arg10: memref<1x32xf32, #tpu.memory_space<vmem>>, %arg11: memref<32x512xf32, #tpu.memory_space<vmem>>, %arg12: memref<1x2x256xf32, #tpu.memory_space<vmem>>) attributes {dimension_semantics = [#tpu.dimension_semantics<parallel>], iteration_bounds = array<i64: 2>, scalar_prefetch = 0 : i64, scratch_operands = 0 : i64, tpu.core_type = #tpu.core_type<tc>, window_params = [{pipeline_mode = #tpu.pipeline_mode<synchronous>, transform_indices = @transform_0, window_bounds = array<i64: 1, 256>}, {transform_indices = @transform_1, window_bounds = array<i64: 1, 2, 256>}, {pipeline_mode = #tpu.pipeline_mode<synchronous>, transform_indices = @transform_2, window_bounds = array<i64: 512, 32>}, {pipeline_mode = #tpu.pipeline_mode<synchronous>, transform_indices = @transform_3, window_bounds = array<i64: 1, 32>}, {pipeline_mode = #tpu.pipeline_mode<synchronous>, transform_indices = @transform_4, window_bounds = array<i64: 32, 32>}, {pipeline_mode = #tpu.pipeline_mode<synchronous>, transform_indices = @transform_5, window_bounds = array<i64: 1, 32>}, {pipeline_mode = #tpu.pipeline_mode<synchronous>, transform_indices = @transform_6, window_bounds = array<i64: 512, 32>}, {pipeline_mode = #tpu.pipeline_mode<synchronous>, transform_indices = @transform_7, window_bounds = array<i64: 1, 32>}, {pipeline_mode = #tpu.pipeline_mode<synchronous>, transform_indices = @transform_8, window_bounds = array<i64: 32, 32>}, {pipeline_mode = #tpu.pipeline_mode<synchronous>, transform_indices = @transform_9, window_bounds = array<i64: 1, 32>}, {pipeline_mode = #tpu.pipeline_mode<synchronous>, transform_indices = @transform_10, window_bounds = array<i64: 32, 512>}, {transform_indices = @transform_11, window_bounds = array<i64: 1, 2, 256>}]} {
    %c0 = arith.constant 0 : index
    %c0_0 = arith.constant 0 : index
    %c0_1 = arith.constant 0 : index
    %0 = vector.load %arg2[%c0, %c0_0, %c0_1] : memref<1x2x256xf32, #tpu.memory_space<vmem>>, vector<1x2x256xf32>
    %1 = vector.shape_cast %0 : vector<1x2x256xf32> to vector<2x256xf32>
    %c0_2 = arith.constant 0 : index
    %c0_3 = arith.constant 0 : index
    %2 = vector.load %arg1[%c0_2, %c0_3] : memref<1x256xi32, #tpu.memory_space<vmem>>, vector<1x256xi32>
    %3 = tpu.iota {dimensions = array<i32: 1>} : vector<1x256xi32>
    %c16_i32 = arith.constant 16 : i32
    %4 = tpu.dynamic_rotate %1 by %c16_i32 dim 1 : vector<2x256xf32>, i32 -> vector<2x256xf32>
    %c16_i32_4 = arith.constant 16 : i32
    %5 = tpu.dynamic_rotate %3 by %c16_i32_4 dim 1 : vector<1x256xi32>, i32 -> vector<1x256xi32>
    %6 = arith.subi %5, %3 : vector<1x256xi32>
    %c16_i32_5 = arith.constant 16 : i32
    %7 = vector.broadcast %c16_i32_5 : i32 to vector<1x256xi32>
    %8 = arith.cmpi eq, %6, %7 : vector<1x256xi32>
    %c-16_i32 = arith.constant -16 : i32
    %9 = vector.broadcast %c-16_i32 : i32 to vector<1x256xi32>
    %10 = arith.cmpi eq, %6, %9 : vector<1x256xi32>
    %11 = arith.ori %8, %10 : vector<1x256xi1>
    %12 = vector.shape_cast %11 : vector<1x256xi1> to vector<1x256xi1>
    %13 = vector.broadcast %12 : vector<1x256xi1> to vector<2x256xi1>
    %14 = arith.select %13, %4, %1 : vector<2x256xi1>, vector<2x256xf32>
    %c240_i32 = arith.constant 240 : i32
    %15 = tpu.dynamic_rotate %1 by %c240_i32 dim 1 : vector<2x256xf32>, i32 -> vector<2x256xf32>
    %c240_i32_6 = arith.constant 240 : i32
    %16 = tpu.dynamic_rotate %3 by %c240_i32_6 dim 1 : vector<1x256xi32>, i32 -> vector<1x256xi32>
    %17 = arith.subi %16, %3 : vector<1x256xi32>
    %c16_i32_7 = arith.constant 16 : i32
    %18 = vector.broadcast %c16_i32_7 : i32 to vector<1x256xi32>
    %19 = arith.cmpi eq, %17, %18 : vector<1x256xi32>
    %c-16_i32_8 = arith.constant -16 : i32
    %20 = vector.broadcast %c-16_i32_8 : i32 to vector<1x256xi32>
    %21 = arith.cmpi eq, %17, %20 : vector<1x256xi32>
    %22 = arith.ori %19, %21 : vector<1x256xi1>
    %23 = vector.shape_cast %22 : vector<1x256xi1> to vector<1x256xi1>
    %24 = vector.broadcast %23 : vector<1x256xi1> to vector<2x256xi1>
    %25 = arith.select %24, %15, %1 : vector<2x256xi1>, vector<2x256xf32>
    %c1_i32 = arith.constant 1 : i32
    %26 = tpu.dynamic_rotate %1 by %c1_i32 dim 1 : vector<2x256xf32>, i32 -> vector<2x256xf32>
    %c1_i32_9 = arith.constant 1 : i32
    %27 = tpu.dynamic_rotate %2 by %c1_i32_9 dim 1 : vector<1x256xi32>, i32 -> vector<1x256xi32>
    %28 = arith.subi %27, %2 : vector<1x256xi32>
    %c1_i32_10 = arith.constant 1 : i32
    %29 = vector.broadcast %c1_i32_10 : i32 to vector<1x256xi32>
    %30 = arith.cmpi eq, %28, %29 : vector<1x256xi32>
    %c-1_i32 = arith.constant -1 : i32
    %31 = vector.broadcast %c-1_i32 : i32 to vector<1x256xi32>
    %32 = arith.cmpi eq, %28, %31 : vector<1x256xi32>
    %33 = arith.ori %30, %32 : vector<1x256xi1>
    %34 = vector.shape_cast %33 : vector<1x256xi1> to vector<1x256xi1>
    %35 = vector.broadcast %34 : vector<1x256xi1> to vector<2x256xi1>
    %36 = arith.select %35, %26, %1 : vector<2x256xi1>, vector<2x256xf32>
    %c255_i32 = arith.constant 255 : i32
    %37 = tpu.dynamic_rotate %1 by %c255_i32 dim 1 : vector<2x256xf32>, i32 -> vector<2x256xf32>
    %c255_i32_11 = arith.constant 255 : i32
    %38 = tpu.dynamic_rotate %2 by %c255_i32_11 dim 1 : vector<1x256xi32>, i32 -> vector<1x256xi32>
    %39 = arith.subi %38, %2 : vector<1x256xi32>
    %c1_i32_12 = arith.constant 1 : i32
    %40 = vector.broadcast %c1_i32_12 : i32 to vector<1x256xi32>
    %41 = arith.cmpi eq, %39, %40 : vector<1x256xi32>
    %c-1_i32_13 = arith.constant -1 : i32
    %42 = vector.broadcast %c-1_i32_13 : i32 to vector<1x256xi32>
    %43 = arith.cmpi eq, %39, %42 : vector<1x256xi32>
    %44 = arith.ori %41, %43 : vector<1x256xi1>
    %45 = vector.shape_cast %44 : vector<1x256xi1> to vector<1x256xi1>
    %46 = vector.broadcast %45 : vector<1x256xi1> to vector<2x256xi1>
    %47 = arith.select %46, %37, %1 : vector<2x256xi1>, vector<2x256xf32>
    %cst = arith.constant 4.000000e+00 : f32
    %48 = vector.broadcast %cst : f32 to vector<2x256xf32>
    %49 = arith.mulf %48, %1 : vector<2x256xf32>
    %50 = arith.subf %49, %14 : vector<2x256xf32>
    %51 = arith.subf %50, %25 : vector<2x256xf32>
    %52 = arith.subf %51, %36 : vector<2x256xf32>
    %53 = arith.subf %52, %47 : vector<2x256xf32>
    %cst_14 = arith.constant 3.844000e+03 : f32
    %54 = vector.broadcast %cst_14 : f32 to vector<2x256xf32>
    %55 = arith.mulf %53, %54 : vector<2x256xf32>
    %56 = vector.extract_strided_slice %1 {offsets = [0, 0], sizes = [1, 256], strides = [1, 1]} : vector<2x256xf32> to vector<1x256xf32>
    %57 = vector.extract_strided_slice %1 {offsets = [1, 0], sizes = [1, 256], strides = [1, 1]} : vector<2x256xf32> to vector<1x256xf32>
    %58 = vector.extract_strided_slice %55 {offsets = [0, 0], sizes = [1, 256], strides = [1, 1]} : vector<2x256xf32> to vector<1x256xf32>
    %59 = vector.extract_strided_slice %55 {offsets = [1, 0], sizes = [1, 256], strides = [1, 1]} : vector<2x256xf32> to vector<1x256xf32>
    %60 = arith.mulf %57, %56 : vector<1x256xf32>
    %61 = arith.mulf %60, %56 : vector<1x256xf32>
    %cst_15 = arith.constant 2.500000e-04 : f32
    %62 = vector.broadcast %cst_15 : f32 to vector<1x256xf32>
    %63 = arith.mulf %62, %58 : vector<1x256xf32>
    %64 = arith.subf %63, %61 : vector<1x256xf32>
    %cst_16 = arith.constant 1.050000e-01 : f32
    %65 = vector.broadcast %cst_16 : f32 to vector<1x256xf32>
    %66 = arith.mulf %65, %56 : vector<1x256xf32>
    %67 = arith.addf %64, %66 : vector<1x256xf32>
    %cst_17 = arith.constant 5.000000e-04 : f32
    %68 = vector.broadcast %cst_17 : f32 to vector<1x256xf32>
    %69 = arith.mulf %68, %59 : vector<1x256xf32>
    %70 = arith.addf %69, %61 : vector<1x256xf32>
    %cst_18 = arith.constant 1.000000e+00 : f32
    %71 = vector.broadcast %cst_18 : f32 to vector<1x256xf32>
    %72 = arith.subf %71, %57 : vector<1x256xf32>
    %cst_19 = arith.constant 4.000000e-02 : f32
    %73 = vector.broadcast %cst_19 : f32 to vector<1x256xf32>
    %74 = arith.mulf %73, %72 : vector<1x256xf32>
    %75 = arith.subf %70, %74 : vector<1x256xf32>
    %76 = tpu.concatenate %56, %57 in 1 : vector<1x256xf32>, vector<1x256xf32> -> vector<1x512xf32>
    %77 = tpu.concatenate %67, %75 in 1 : vector<1x256xf32>, vector<1x256xf32> -> vector<1x512xf32>
    %c0_20 = arith.constant 0 : index
    %c0_21 = arith.constant 0 : index
    %78 = vector.load %arg3[%c0_20, %c0_21] : memref<512x32xf32, #tpu.memory_space<vmem>>, vector<512x32xf32>
    %cst_22 = arith.constant dense<0.000000e+00> : vector<1x32xf32>
    %79 = tpu.matmul %76, %78, %cst_22 {dimension_numbers = #tpu.dot_dimension_numbers<[1], [0], [0], [1], [0, 0, 1, 1], [], []>} : vector<1x512xf32>, vector<512x32xf32>, vector<1x32xf32> -> vector<1x32xf32>
    %c0_23 = arith.constant 0 : index
    %c0_24 = arith.constant 0 : index
    %80 = vector.load %arg4[%c0_23, %c0_24] : memref<1x32xf32, #tpu.memory_space<vmem>>, vector<1x32xf32>
    %81 = arith.addf %79, %80 : vector<1x32xf32>
    %82 = math.tanh %81 : vector<1x32xf32>
    %c0_25 = arith.constant 0 : index
    %c0_26 = arith.constant 0 : index
    %83 = vector.load %arg5[%c0_25, %c0_26] : memref<32x32xf32, #tpu.memory_space<vmem>>, vector<32x32xf32>
    %cst_27 = arith.constant dense<0.000000e+00> : vector<1x32xf32>
    %84 = tpu.matmul %82, %83, %cst_27 {dimension_numbers = #tpu.dot_dimension_numbers<[1], [0], [0], [1], [0, 0, 1, 1], [], []>} : vector<1x32xf32>, vector<32x32xf32>, vector<1x32xf32> -> vector<1x32xf32>
    %c0_28 = arith.constant 0 : index
    %c0_29 = arith.constant 0 : index
    %85 = vector.load %arg6[%c0_28, %c0_29] : memref<1x32xf32, #tpu.memory_space<vmem>>, vector<1x32xf32>
    %86 = arith.addf %84, %85 : vector<1x32xf32>
    %c0_30 = arith.constant 0 : index
    %c0_31 = arith.constant 0 : index
    %87 = vector.load %arg7[%c0_30, %c0_31] : memref<512x32xf32, #tpu.memory_space<vmem>>, vector<512x32xf32>
    %cst_32 = arith.constant dense<0.000000e+00> : vector<1x32xf32>
    %88 = tpu.matmul %77, %87, %cst_32 {dimension_numbers = #tpu.dot_dimension_numbers<[1], [0], [0], [1], [0, 0, 1, 1], [], []>} : vector<1x512xf32>, vector<512x32xf32>, vector<1x32xf32> -> vector<1x32xf32>
    %c0_33 = arith.constant 0 : index
    %c0_34 = arith.constant 0 : index
    %89 = vector.load %arg8[%c0_33, %c0_34] : memref<1x32xf32, #tpu.memory_space<vmem>>, vector<1x32xf32>
    %90 = arith.addf %88, %89 : vector<1x32xf32>
    %c0_35 = arith.constant 0 : index
    %c0_36 = arith.constant 0 : index
    %91 = vector.load %arg9[%c0_35, %c0_36] : memref<32x32xf32, #tpu.memory_space<vmem>>, vector<32x32xf32>
    %cst_37 = arith.constant dense<0.000000e+00> : vector<1x32xf32>
    %92 = tpu.matmul %90, %91, %cst_37 {dimension_numbers = #tpu.dot_dimension_numbers<[1], [0], [0], [1], [0, 0, 1, 1], [], []>} : vector<1x32xf32>, vector<32x32xf32>, vector<1x32xf32> -> vector<1x32xf32>
    %c0_38 = arith.constant 0 : index
    %c0_39 = arith.constant 0 : index
    %93 = vector.load %arg10[%c0_38, %c0_39] : memref<1x32xf32, #tpu.memory_space<vmem>>, vector<1x32xf32>
    %94 = arith.addf %92, %93 : vector<1x32xf32>
    %95 = arith.mulf %86, %94 : vector<1x32xf32>
    %c0_40 = arith.constant 0 : index
    %c0_41 = arith.constant 0 : index
    %96 = vector.load %arg11[%c0_40, %c0_41] : memref<32x512xf32, #tpu.memory_space<vmem>>, vector<32x512xf32>
    %cst_42 = arith.constant dense<0.000000e+00> : vector<1x512xf32>
    %97 = tpu.matmul %95, %96, %cst_42 {dimension_numbers = #tpu.dot_dimension_numbers<[1], [0], [0], [1], [0, 0, 1, 1], [], []>} : vector<1x32xf32>, vector<32x512xf32>, vector<1x512xf32> -> vector<1x512xf32>
    %98 = vector.extract_strided_slice %97 {offsets = [0, 0], sizes = [1, 256], strides = [1, 1]} : vector<1x512xf32> to vector<1x256xf32>
    %c0_43 = arith.constant 0 : index
    %c0_44 = arith.constant 0 : index
    %c0_45 = arith.constant 0 : index
    %99 = vector.load %arg12[%c0_43, %c0_44, %c0_45] : memref<1x2x256xf32, #tpu.memory_space<vmem>>, vector<1x1x256xf32>
    %100 = vector.shape_cast %99 : vector<1x1x256xf32> to vector<1x256xf32>
    %101 = vector.shape_cast %98 : vector<1x256xf32> to vector<1x1x256xf32>
    tpu.vector_store %arg12[%c0_43, %c0_44, %c0_45], %101 {strides = array<i32>} : memref<1x2x256xf32, #tpu.memory_space<vmem>>, vector<1x1x256xf32>,
    %102 = vector.extract_strided_slice %97 {offsets = [0, 256], sizes = [1, 256], strides = [1, 1]} : vector<1x512xf32> to vector<1x256xf32>
    %c0_46 = arith.constant 0 : index
    %c1 = arith.constant 1 : index
    %c0_47 = arith.constant 0 : index
    %103 = vector.load %arg12[%c0_46, %c1, %c0_47] : memref<1x2x256xf32, #tpu.memory_space<vmem>>, vector<1x1x256xf32>
    %104 = vector.shape_cast %103 : vector<1x1x256xf32> to vector<1x256xf32>
    %105 = vector.shape_cast %102 : vector<1x256xf32> to vector<1x1x256xf32>
    tpu.vector_store %arg12[%c0_46, %c1, %c0_47], %105 {strides = array<i32>} : memref<1x2x256xf32, #tpu.memory_space<vmem>>, vector<1x1x256xf32>,
    return
  }
  func.func @transform_0(%arg0: i32) -> (i32, i32) {
    %c0_i32 = arith.constant 0 : i32
    %c0_i32_0 = arith.constant 0 : i32
    %c0_i32_1 = arith.constant 0 : i32
    return %c0_i32, %c0_i32_0 : i32, i32
  }
  func.func @transform_1(%arg0: i32) -> (i32, i32, i32) {
    %c0_i32 = arith.constant 0 : i32
    %c0_i32_0 = arith.constant 0 : i32
    %c0_i32_1 = arith.constant 0 : i32
    return %arg0, %c0_i32, %c0_i32_0 : i32, i32, i32
  }
  func.func @transform_2(%arg0: i32) -> (i32, i32) {
    %c0_i32 = arith.constant 0 : i32
    %c0_i32_0 = arith.constant 0 : i32
    %c0_i32_1 = arith.constant 0 : i32
    return %c0_i32, %c0_i32_0 : i32, i32
  }
  func.func @transform_3(%arg0: i32) -> (i32, i32) {
    %c0_i32 = arith.constant 0 : i32
    %c0_i32_0 = arith.constant 0 : i32
    %c0_i32_1 = arith.constant 0 : i32
    return %c0_i32, %c0_i32_0 : i32, i32
  }
  func.func @transform_4(%arg0: i32) -> (i32, i32) {
    %c0_i32 = arith.constant 0 : i32
    %c0_i32_0 = arith.constant 0 : i32
    %c0_i32_1 = arith.constant 0 : i32
    return %c0_i32, %c0_i32_0 : i32, i32
  }
  func.func @transform_5(%arg0: i32) -> (i32, i32) {
    %c0_i32 = arith.constant 0 : i32
    %c0_i32_0 = arith.constant 0 : i32
    %c0_i32_1 = arith.constant 0 : i32
    return %c0_i32, %c0_i32_0 : i32, i32
  }
  func.func @transform_6(%arg0: i32) -> (i32, i32) {
    %c0_i32 = arith.constant 0 : i32
    %c0_i32_0 = arith.constant 0 : i32
    %c0_i32_1 = arith.constant 0 : i32
    return %c0_i32, %c0_i32_0 : i32, i32
  }
  func.func @transform_7(%arg0: i32) -> (i32, i32) {
    %c0_i32 = arith.constant 0 : i32
    %c0_i32_0 = arith.constant 0 : i32
    %c0_i32_1 = arith.constant 0 : i32
    return %c0_i32, %c0_i32_0 : i32, i32
  }
  func.func @transform_8(%arg0: i32) -> (i32, i32) {
    %c0_i32 = arith.constant 0 : i32
    %c0_i32_0 = arith.constant 0 : i32
    %c0_i32_1 = arith.constant 0 : i32
    return %c0_i32, %c0_i32_0 : i32, i32
  }
  func.func @transform_9(%arg0: i32) -> (i32, i32) {
    %c0_i32 = arith.constant 0 : i32
    %c0_i32_0 = arith.constant 0 : i32
    %c0_i32_1 = arith.constant 0 : i32
    return %c0_i32, %c0_i32_0 : i32, i32
  }
  func.func @transform_10(%arg0: i32) -> (i32, i32) {
    %c0_i32 = arith.constant 0 : i32
    %c0_i32_0 = arith.constant 0 : i32
    %c0_i32_1 = arith.constant 0 : i32
    return %c0_i32, %c0_i32_0 : i32, i32
  }
  func.func @transform_11(%arg0: i32) -> (i32, i32, i32) {
    %c0_i32 = arith.constant 0 : i32
    %c0_i32_0 = arith.constant 0 : i32
    %c0_i32_1 = arith.constant 0 : i32
    return %arg0, %c0_i32, %c0_i32_0 : i32, i32, i32
  }
}

</mosaic_0001>

<bundles_post_ra>
// kernel: deeponet_pod_2_forward.1
= control target key start
LH: loop header
LB: loop body
LE: loop exit
PB: predicated region body
PF: predicated region fallthrough
CT: control target
= control target key end

     0   :  { %s1933_s17 = smov 0   ;;  %s2640_s0 = inlined_call_operand.vmem [shape: s32[1,256], index: 0, kind: input, shape index: {}]   ;;  %s2641_s1 = inlined_call_operand.vmem [shape: f32[2,2,256], index: 1, kind: input, shape index: {}]   ;;  %s2642_s2 = inlined_call_operand.vmem [shape: f32[512,32], index: 2, kind: input, shape index: {}]   ;;  %s2643_s3 = inlined_call_operand.vmem [shape: f32[1,32], index: 3, kind: input, shape index: {}]   ;;  %s2644_s4 = inlined_call_operand.vmem [shape: f32[32,32], index: 4, kind: input, shape index: {}]   ;;  %s2645_s5 = inlined_call_operand.vmem [shape: f32[1,32], index: 5, kind: input, shape index: {}]   ;;  %s2646_s6 = inlined_call_operand.vmem [shape: f32[512,32], index: 6, kind: input, shape index: {}]   ;;  %s2647_s7 = inlined_call_operand.vmem [shape: f32[1,32], index: 7, kind: input, shape index: {}]   ;;  %s2648_s8 = inlined_call_operand.vmem [shape: f32[32,32], index: 8, kind: input, shape index: {}]   ;;  %s2649_s9 = inlined_call_operand.vmem [shape: f32[1,32], index: 9, kind: input, shape index: {}]   ;;  %s2650_s10 = inlined_call_operand.vmem [shape: f32[32,512], index: 10, kind: input, shape index: {}]   ;;  %s2651_s11 = inlined_call_operand.vmem [shape: f32[2,2,256], index: 11, kind: output, shape index: {}]  }
   0x1 LB: > { %s1488_s18 = sadd.s32 4294967295, %s1861_s17   ;;  %p1492_p0 = scmp.ge.s32.totalorder %s1861_s17, 1  ;;  %s1861_s17 = sphi %s1933_s17, %s21_s17  }
   0x2   : > { %p337_p1 = scmp.lt.s32.totalorder %s1861_s17, 3 }
   0x4   : > { %p338_p2 = pnand %p1492_p0, %p337_p1 }
   0x5   : > { %v676_v0 = vld [vmem:[%s2642_s2 + $0x80] sm:$0xff] (!%p338_p2)  ;;  %v677_v1 = vld [vmem:[%s2642_s2 + $0x88] sm:$0xff] (!%p338_p2)  ;;  %v389_v3 = vlaneseq (!%p338_p2)  ;;  %v678_v12 = vld [vmem:[%s2642_s2 + $0x90] sm:$0xff] (!%p338_p2)  ;;  %s1863_s21 = smov (!%p338_p2), 112   ;;  %s1864_s28 = smov (!%p338_p2), 16   ;;  %vm1869_vm4 = vmmov (!%p338_p2), 0  }
   0x6   : > { %341 = sbr.rel (%p338_p2) target bundleno = 955 (0x3bb), region = 64  ;;  %v660_v2 = vld [vmem:[%s2642_s2] sm:$0xff] (!%p338_p2)  ;;  %v1679_v4 = vpack.c.bf16 (!%p338_p2), %v677_v1, %v676_v0  ;;  %v661_v5 = vld [vmem:[%s2642_s2 + $0x8] sm:$0xff] (!%p338_p2)  ;;  %v679_v15 = vld [vmem:[%s2642_s2 + $0x98] sm:$0xff] (!%p338_p2)  ;;  %p2025_p3 = scmp.lt.s32.totalorder (!%p338_p2), %s1488_s18, 1 }
   0x7   : > { %v708_v6 = vld [vmem:[%s2642_s2 + $0x180] sm:$0xff] (!%p338_p2)  ;;  %v709_v7 = vld [vmem:[%s2642_s2 + $0x188] sm:$0xff] (!%p338_p2)  ;;  %v1681_v8 = vpack.c.bf16 (!%p338_p2), %v661_v5, %v660_v2  ;;  %v1969_v13 = vand.u32 (!%p338_p2), 127, %v389_v3  ;;  %v662_v16 = vld [vmem:[%s2642_s2 + $0x10] sm:$0xff] (!%p338_p2)  ;;  %v1683_v18 = vpack.c.bf16 (!%p338_p2), %v679_v15, %v678_v12  ;;  %v2094_v63 = vshrl.u32 (!%p338_p2), %v389_v3, 7  ;;  %s1866_s20 = smov (!%p338_p2), 1  }
   0x8   : > { %v1711_v9 = vpack.c.bf16 (!%p338_p2), %v709_v7, %v708_v6  ;;  %v692_v10 = vld [vmem:[%s2642_s2 + $0x100] sm:$0xff] (!%p338_p2)  ;;  %v693_v11 = vld [vmem:[%s2642_s2 + $0x108] sm:$0xff] (!%p338_p2)  ;;  %1680 = vmatprep.subr.bf16.mxu0 (!%p338_p2), %v1679_v4  ;;  %v663_v17 = vld [vmem:[%s2642_s2 + $0x18] sm:$0xff] (!%p338_p2)  ;;  %v1865_v4 = vmov (!%p338_p2), 1983009808   ;;  %s1867_s30 = smov (!%p338_p2), 127  }
   0x9   : > { %v1713_v14 = vpack.c.bf16 (!%p338_p2), %v693_v11, %v692_v10  ;;  %1682 = vmatpush3.bf16.msra.mxu0 (!%p338_p2), %v1681_v8  ;;  %v1685_v19 = vpack.c.bf16 (!%p338_p2), %v663_v17, %v662_v16  ;;  %v710_v20 = vld [vmem:[%s2642_s2 + $0x190] sm:$0xff] (!%p338_p2)  ;;  %v711_v21 = vld [vmem:[%s2642_s2 + $0x198] sm:$0xff] (!%p338_p2)  ;;  %v680_v25 = vld [vmem:[%s2642_s2 + $0xa0] sm:$0xff] (!%p338_p2)  ;;  %445 = vrot.lane.b32.xlu1 (!%p338_p2), %v1969_v13, %s1863_s21  ;;  %v2012_v32 = vadd.s32 (!%p338_p2), 128, %v1969_v13  ;;  %v394_v5 = vunpack.c.l.s4 (!%p338_p2), %v1865_v4 }
   0xa   : > { %1712 = vmatprep.subr.bf16.mxu1 (!%p338_p2), %v1711_v9  ;;  %v694_v22 = vld [vmem:[%s2642_s2 + $0x110] sm:$0xff] (!%p338_p2)  ;;  %v1715_v23 = vpack.c.bf16 (!%p338_p2), %v711_v21, %v710_v20  ;;  %v695_v24 = vld [vmem:[%s2642_s2 + $0x118] sm:$0xff] (!%p338_p2)  ;;  %v681_v26 = vld [vmem:[%s2642_s2 + $0xa8] sm:$0xff] (!%p338_p2)  ;;  %1684 = vmatprep.subr.bf16.mxu0 (!%p338_p2), %v1683_v18  ;;  %v624_v16 = vsub.s32 (!%p338_p2), 2, %v2094_v63  ;;  %v634_v17 = vsub.s32 (!%p338_p2), 3, %v2094_v63  ;;  %vm407_vm0 = vcmp.lt.s32.totalorder (!%p338_p2), %v1969_v13, 16 }
   0xb   : > { %1714 = vmatpush3.bf16.msra.mxu1 (!%p338_p2), %v1713_v14  ;;  %v1717_v27 = vpack.c.bf16 (!%p338_p2), %v695_v24, %v694_v22  ;;  %v1687_v28 = vpack.c.bf16 (!%p338_p2), %v681_v26, %v680_v25  ;;  %v664_v29 = vld [vmem:[%s2642_s2 + $0x20] sm:$0xff] (!%p338_p2)  ;;  %v665_v30 = vld [vmem:[%s2642_s2 + $0x28] sm:$0xff] (!%p338_p2)  ;;  %410 = vrot.lane.b32.xlu0 (!%p338_p2), %v1969_v13, %s1864_s28  ;;  %v682_v38 = vld [vmem:[%s2642_s2 + $0xb0] sm:$0xff] (!%p338_p2)  ;;  %v2141_v24 = vsub.s32 (!%p338_p2), 0, %v2094_v63  ;;  %vm442_vm1 = vcmp.lt.s32.totalorder (!%p338_p2), %v1969_v13, 112 }
   0xc   : > { %v712_v31 = vld [vmem:[%s2642_s2 + $0x1a0] sm:$0xff] (!%p338_p2)  ;;  %1716 = vmatprep.subr.bf16.mxu1 (!%p338_p2), %v1715_v23  ;;  %v713_v33 = vld [vmem:[%s2642_s2 + $0x1a8] sm:$0xff] (!%p338_p2)  ;;  %v1689_v36 = vpack.c.bf16 (!%p338_p2), %v665_v30, %v664_v29  ;;  %v683_v39 = vld [vmem:[%s2642_s2 + $0xb8] sm:$0xff] (!%p338_p2)  ;;  %v395_v23 = vunpack.c.0.s8 (!%p338_p2), %v394_v5  ;;  %v2149_v29 = vsub.s32 (!%p338_p2), 1, %v2094_v63  ;;  %vm477_vm13 = vcmp.lt.s32.totalorder (!%p338_p2), %v1969_v13, 1 }
   0xd   : > { %v696_v34 = vld [vmem:[%s2642_s2 + $0x120] sm:$0xff]  ;;  %v697_v35 = vld [vmem:[%s2642_s2 + $0x128] sm:$0xff]  ;;  %1686 = vmatpush3.bf16.msra.mxu0 %v1685_v19  ;;  %v1719_v37 = vpack.c.bf16 %v713_v33, %v712_v31  ;;  %v666_v40 = vld [vmem:[%s2642_s2 + $0x30] sm:$0xff]  ;;  %v1691_v42 = vpack.c.bf16 %v683_v39, %v682_v38  ;;  %447 = vrot.lane.b32.xlu1 %v2012_v32, %s1863_s21  ;;  %s2662_s18 = smov (!%p2025_p3, %s1488_s18), 1 }
   0xe   : > { %1688 = vmatprep.subr.bf16.mxu0 %v1687_v28  ;;  %v1721_v41 = vpack.c.bf16 %v697_v35, %v696_v34  ;;  %v667_v43 = vld [vmem:[%s2642_s2 + $0x38] sm:$0xff]  ;;  %v714_v44 = vld [vmem:[%s2642_s2 + $0x1b0] sm:$0xff]  ;;  %v684_v49 = vld [vmem:[%s2642_s2 + $0xc0] sm:$0xff]  ;;  %s1505_s12 = sshll.u32 %s2662_s18, 2 }
   0xf   : > { %1718 = vmatpush3.bf16.msra.mxu1 %v1717_v27  ;;  %v715_v45 = vld [vmem:[%s2642_s2 + $0x1b8] sm:$0xff]  ;;  %v698_v47 = vld [vmem:[%s2642_s2 + $0x130] sm:$0xff]  ;;  %v685_v50 = vld [vmem:[%s2642_s2 + $0xc8] sm:$0xff]  ;;  %412 = vrot.lane.b32.xlu0 %v2012_v32, %s1864_s28  ;;  %v1693_v51 = vpack.c.bf16 %v667_v43, %v666_v40  ;;  %s381_s13 = scalar_lea.vmem %s2641_s1, %s1505_s12  ;;  %v2182_v43 = vsub.s32 %v395_v23, %v2094_v63 }
  0x10   : > { %1720 = vmatprep.subr.bf16.mxu1 %v1719_v37  ;;  %v1723_v46 = vpack.c.bf16 %v715_v45, %v714_v44  ;;  %v699_v48 = vld [vmem:[%s2642_s2 + $0x138] sm:$0xff]  ;;  %v716_v52 = vld [vmem:[%s2642_s2 + $0x1c0] sm:$0xff]  ;;  %v717_v53 = vld [vmem:[%s2642_s2 + $0x1c8] sm:$0xff]  ;;  %v1695_v55 = vpack.c.bf16 %v685_v50, %v684_v49 }
  0x11   : > { %1690 = vmatpush3.bf16.msra.mxu0 %v1689_v36  ;;  %v1725_v54 = vpack.c.bf16 %v699_v48, %v698_v47  ;;  %v668_v56 = vld [vmem:[%s2642_s2 + $0x40] sm:$0xff]  ;;  %v669_v57 = vld [vmem:[%s2642_s2 + $0x48] sm:$0xff]  ;;  %v1727_v59 = vpack.c.bf16 %v717_v53, %v716_v52  ;;  %v686_v61 = vld [vmem:[%s2642_s2 + $0xd0] sm:$0xff] }
  0x12   : > { %1692 = vmatprep.subr.bf16.mxu0 %v1691_v42  ;;  %v700_v58 = vld [vmem:[%s2642_s2 + $0x140] sm:$0xff]  ;;  %v701_v60 = vld [vmem:[%s2642_s2 + $0x148] sm:$0xff]  ;;  %v687_v62 = vld [vmem:[%s2642_s2 + $0xd8] sm:$0xff]  ;;  %v1697_v2 = vpack.c.bf16 %v669_v57, %v668_v56 }
  0x13   : > { %1722 = vmatpush3.bf16.msra.mxu1 %v1721_v41  ;;  %v718_v0 = vld [vmem:[%s2642_s2 + $0x1d0] sm:$0xff]  ;;  %v719_v1 = vld [vmem:[%s2642_s2 + $0x1d8] sm:$0xff]  ;;  %v1729_v6 = vpack.c.bf16 %v701_v60, %v700_v58  ;;  %v1699_v7 = vpack.c.bf16 %v687_v62, %v686_v61  ;;  %v688_v14 = vld [vmem:[%s2642_s2 + $0xe0] sm:$0xff] }
  0x14   : > { %1724 = vmatprep.subr.bf16.mxu1 %v1723_v46  ;;  %v670_v8 = vld [vmem:[%s2642_s2 + $0x50] sm:$0xff]  ;;  %v671_v9 = vld [vmem:[%s2642_s2 + $0x58] sm:$0xff]  ;;  %v1731_v11 = vpack.c.bf16 %v719_v1, %v718_v0  ;;  %v689_v15 = vld [vmem:[%s2642_s2 + $0xe8] sm:$0xff] }
  0x15   : > { %1694 = vmatpush3.bf16.msra.mxu0 %v1693_v51  ;;  %v702_v10 = vld [vmem:[%s2642_s2 + $0x150] sm:$0xff]  ;;  %v703_v12 = vld [vmem:[%s2642_s2 + $0x158] sm:$0xff]  ;;  %v720_v18 = vld [vmem:[%s2642_s2 + $0x1e0] sm:$0xff]  ;;  %v1701_v20 = vpack.c.bf16 %v671_v9, %v670_v8  ;;  %v1703_v26 = vpack.c.bf16 %v689_v15, %v688_v14 }
  0x16   : > { %1696 = vmatprep.subr.bf16.mxu0 %v1695_v55  ;;  %v721_v19 = vld [vmem:[%s2642_s2 + $0x1e8] sm:$0xff]  ;;  %v672_v21 = vld [vmem:[%s2642_s2 + $0x60] sm:$0xff]  ;;  %v1733_v25 = vpack.c.bf16 %v703_v12, %v702_v10  ;;  %v690_v34 = vld [vmem:[%s2642_s2 + $0xf0] sm:$0xff] }
  0x17   : > { %1726 = vmatpush3.bf16.msra.mxu1 %v1725_v54  ;;  %v673_v22 = vld [vmem:[%s2642_s2 + $0x68] sm:$0xff]  ;;  %v704_v27 = vld [vmem:[%s2642_s2 + $0x160] sm:$0xff]  ;;  %v1735_v31 = vpack.c.bf16 %v721_v19, %v720_v18  ;;  %v691_v35 = vld [vmem:[%s2642_s2 + $0xf8] sm:$0xff] }
  0x18   : > { %1728 = vmatprep.subr.bf16.mxu1 %v1727_v59  ;;  %v2146_v28 = vld [vmem:[%s381_s13] sm:$0xf]  ;;  %v705_v33 = vld [vmem:[%s2642_s2 + $0x168] sm:$0xff]  ;;  %v722_v38 = vld [vmem:[%s2642_s2 + $0x1f0] sm:$0xff]  ;;  %v1705_v42 = vpack.c.bf16 %v673_v22, %v672_v21  ;;  %v1707_v45 = vpack.c.bf16 %v691_v35, %v690_v34  ;;  %v1868_v35 = vmov 0.0|0.0  }
  0x19   : > { %1698 = vmatpush3.bf16.msra.mxu0 %v1697_v2  ;;  %v388_v30 = vld [vmem:[%s2640_s0] sm:$0x3]  ;;  %v625_v36 = vrot.slane %v2146_v28, %v624_v16  ;;  %v635_v37 = vrot.slane %v2146_v28, %v634_v17  ;;  %v723_v39 = vld [vmem:[%s2642_s2 + $0x1f8] sm:$0xff]  ;;  %v1737_v44 = vpack.c.bf16 %v705_v33, %v704_v27  ;;  %v674_v46 = vld [vmem:[%s2642_s2 + $0x70] sm:$0xff]  ;;  %v2208_v54 = vrot.slane %v2146_v28, %v2182_v43 }
  0x1a   : > { %1700 = vmatprep.subr.bf16.mxu0 %v1699_v7  ;;  %v2176_v40 = vrot.slane %v388_v30, %v2149_v29  ;;  %v2179_v41 = vrot.slane %v388_v30, %v2141_v24  ;;  %v675_v47 = vld [vmem:[%s2642_s2 + $0x78] sm:$0xff]  ;;  %v1739_v48 = vpack.c.bf16 %v723_v39, %v722_v38  ;;  %v706_v49 = vld [vmem:[%s2642_s2 + $0x170] sm:$0xff]  ;;  %v961_v51 = vld [vmem:[%s2646_s6 + $0x80] sm:$0xff]  ;;  %v621_v59 = vrot.slane %v2146_v28, %v2141_v24 }
  0x1b   : > { %1730 = vmatpush3.bf16.msra.mxu1 %v1729_v6  ;;  %789 = vmatprep.mubr.f32.mxu0 %v625_v36  ;;  %v707_v50 = vld [vmem:[%s2642_s2 + $0x178] sm:$0xff]  ;;  %v962_v52 = vld [vmem:[%s2646_s6 + $0x88] sm:$0xff]  ;;  %v1709_v53 = vpack.c.bf16 %v675_v47, %v674_v46  ;;  %v945_v57 = vld [vmem:[%s2646_s6] sm:$0xff]  ;;  %v631_v60 = vrot.slane %v2146_v28, %v2149_v29  ;;  %v2224_v61 = vcombine.high %v2208_v54, %v2208_v54 }
  0x1c   : > { %1732 = vmatprep.subr.bf16.mxu1 %v1731_v11  ;;  %859 = vmatprep.mubr.f32.mxu1 %v635_v37  ;;  %v1741_v55 = vpack.c.bf16 %v707_v50, %v706_v49  ;;  %v1749_v56 = vpack.c.bf16 %v962_v52, %v961_v51  ;;  %v946_v58 = vld [vmem:[%s2646_s6 + $0x8] sm:$0xff]  ;;  %v963_v0 = vld [vmem:[%s2646_s6 + $0x90] sm:$0xff]  ;;  %v964_v1 = vld [vmem:[%s2646_s6 + $0x98] sm:$0xff] }
  0x1d   : > { %1702 = vmatpush3.bf16.msra.mxu0 %v1701_v20  ;;  %490 = vrot.lane.b32.xlu1 %v2176_v40, %s1866_s20  ;;  %v1751_v62 = vpack.c.bf16 %v946_v58, %v945_v57  ;;  %v1753_v2 = vpack.c.bf16 %v964_v1, %v963_v0  ;;  %v947_v4 = vld [vmem:[%s2646_s6 + $0x10] sm:$0xff]  ;;  %v948_v5 = vld [vmem:[%s2646_s6 + $0x18] sm:$0xff]  ;;  %v965_v8 = vld [vmem:[%s2646_s6 + $0xa0] sm:$0xff] }
  0x1e   : > { %1704 = vmatprep.subr.bf16.mxu0 %v1703_v26  ;;  %488 = vrot.lane.b32.xlu0 %v2179_v41, %s1866_s20  ;;  %v1755_v6 = vpack.c.bf16 %v948_v5, %v947_v4  ;;  %v966_v9 = vld [vmem:[%s2646_s6 + $0xa8] sm:$0xff]  ;;  %v949_v12 = vld [vmem:[%s2646_s6 + $0x20] sm:$0xff]  ;;  %v967_v18 = vld [vmem:[%s2646_s6 + $0xb0] sm:$0xff] }
  0x1f   : > { %1734 = vmatpush3.bf16.msra.mxu1 %v1733_v25  ;;  %v1757_v11 = vpack.c.bf16 %v966_v9, %v965_v8  ;;  %v950_v14 = vld [vmem:[%s2646_s6 + $0x28] sm:$0xff]  ;;  %v968_v19 = vld [vmem:[%s2646_s6 + $0xb8] sm:$0xff]  ;;  %v866_v21 = vld [vmem:[%s2644_s4] sm:$0xff] }
  0x20   : > { %1736 = vmatprep.subr.bf16.mxu1 %v1735_v31  ;;  %v1759_v15 = vpack.c.bf16 %v950_v14, %v949_v12  ;;  %v867_v22 = vld [vmem:[%s2644_s4 + $0x8] sm:$0xff]  ;;  %v951_v23 = vld [vmem:[%s2646_s6 + $0x30] sm:$0xff]  ;;  %v1761_v26 = vpack.c.bf16 %v968_v19, %v967_v18  ;;  %v952_v27 = vld [vmem:[%s2646_s6 + $0x38] sm:$0xff] }
  0x21   : > { %1706 = vmatpush3.bf16.msra.mxu0 %v1705_v42  ;;  %525 = vrot.lane.b32.xlu1 %v2176_v40, %s1867_s30  ;;  %v969_v30 = vld [vmem:[%s2646_s6 + $0xc0] sm:$0xff]  ;;  %v970_v31 = vld [vmem:[%s2646_s6 + $0xc8] sm:$0xff]  ;;  %v868_v36 = vld [vmem:[%s2644_s4 + $0x10] sm:$0xff]  ;;  %v1763_v46 = vpack.c.bf16 %v952_v27, %v951_v23 }
  0x22   : > { %1708 = vmatprep.subr.bf16.mxu0 %v1707_v45  ;;  %523 = vrot.lane.b32.xlu0 %v2179_v41, %s1867_s30  ;;  %v869_v38 = vld [vmem:[%s2644_s4 + $0x18] sm:$0xff]  ;;  %v953_v39 = vld [vmem:[%s2646_s6 + $0x40] sm:$0xff]  ;;  %v954_v42 = vld [vmem:[%s2646_s6 + $0x48] sm:$0xff]  ;;  %v1744_v45 = vpack.c.bf16 %v867_v22, %v866_v21  ;;  %v1765_v47 = vpack.c.bf16 %v970_v31, %v969_v30 }
  0x23   : > { %1738 = vmatpush3.bf16.msra.mxu1 %v1737_v44  ;;  %v972_v49 = vld [vmem:[%s2646_s6 + $0xd8] sm:$0xff]  ;;  %v993_v52 = vld [vmem:[%s2646_s6 + $0x180] sm:$0xff]  ;;  %v955_v0 = vld [vmem:[%s2646_s6 + $0x50] sm:$0xff] }
  0x24   : > { %1740 = vmatprep.subr.bf16.mxu1 %v1739_v48  ;;  %v971_v48 = vld [vmem:[%s2646_s6 + $0xd0] sm:$0xff]  ;;  %v956_v1 = vld [vmem:[%s2646_s6 + $0x58] sm:$0xff]  ;;  %v973_v4 = vld [vmem:[%s2646_s6 + $0xe0] sm:$0xff] }
  0x25   : > { %1710 = vmatpush3.bf16.msra.mxu0 %v1709_v53  ;;  %405 = vrot.lane.b32.xlu1 %v2224_v61, %s1864_s28  ;;  %v994_v53 = vld [vmem:[%s2646_s6 + $0x188] sm:$0xff]  ;;  %v1769_v58 = vpack.c.bf16 %v972_v49, %v971_v48  ;;  %v975_v21 = vld [vmem:[%s2646_s6 + $0xf0] sm:$0xff]  ;;  %v976_v22 = vld [vmem:[%s2646_s6 + $0xf8] sm:$0xff] }
  0x26   : > { %403 = vrot.lane.b32.xlu0 %v2208_v54, %s1864_s28  ;;  %1743 = vmatprep.subr.bf16.mxu0 %v1868_v35  ;;  %v974_v5 = vld [vmem:[%s2646_s6 + $0xe8] sm:$0xff]  ;;  %v1777_v27 = vpack.c.bf16 %v976_v22, %v975_v21  ;;  %v959_v30 = vld [vmem:[%s2646_s6 + $0x70] sm:$0xff]  ;;  %v960_v31 = vld [vmem:[%s2646_s6 + $0x78] sm:$0xff]  ;;  %v601_v22 = vrot.slane %v2146_v28, 7  ;;  %s386_s28 = scalar_lea.vmem %s2651_s11, %s1505_s12 }
  0x27   : > { %1742 = vmatpush3.bf16.msra.mxu1 %v1741_v55  ;;  %v1747_v55 = vpack.c.bf16 %v869_v38, %v868_v36  ;;  %v958_v8 = vld [vmem:[%s2646_s6 + $0x68] sm:$0xff] }
  0x28   : > { %1750 = vmatprep.subr.bf16.mxu1 %v1749_v56  ;;  %790 = vmatmul.mubr.f32.vlgmr.msra.gmra.mrb[0].mxu0 %v621_v59  ;;  %v1767_v56 = vpack.c.bf16 %v954_v42, %v953_v39 }
  0x29   : > { %440 = vrot.lane.b32.xlu1 %v2224_v61, %s1863_s21  ;;  %1745 = vmatpush3.bf16.msra.mxu0 %v1744_v45 }
  0x2a   : > { %860 = vmatmul.mubr.f32.vlgmr.msra.gmra.mrb[0].mxu1 %v631_v60  ;;  %438 = vrot.lane.b32.xlu0 %v2208_v54, %s1863_s21  ;;  %v1870_v60 = vmov 0.0  }
  0x2b   : > { %1752 = vmatpush3.bf16.msra.mxu1 %v1751_v62  ;;  %1746 = vmatprep.subr.bf16.mxu0 %v1868_v35  ;;  %v1781_v62 = vpack.c.bf16 %v994_v53, %v993_v52 }
  0x2c   : > { %1754 = vmatprep.subr.bf16.mxu1 %v1753_v2  ;;  %1665 = vmatprep.mubr.msk.f32.mxu0 %vm1869_vm4, %v1870_v60 }
  0x2d   : > { %475 = vrot.lane.b32.xlu1 %v2224_v61, %s1866_s20  ;;  %1748 = vmatpush3.bf16.msra.mxu0 %v1747_v55 }
  0x2e   : > { %473 = vrot.lane.b32.xlu0 %v2208_v54, %s1866_s20  ;;  %1782 = vmatprep.subr.bf16.mxu0 %v1781_v62  ;;  %v551_v62 = vmul.f32 4.0, %v2146_v28 }
  0x2f   : > { %1756 = vmatpush3.bf16.msra.mxu1 %v1755_v6  ;;  %v1773_v6 = vpack.c.bf16 %v974_v5, %v973_v4 }
  0x30   : > { %1758 = vmatprep.subr.bf16.mxu1 %v1757_v11  ;;  %v1871_v11 = vmov 0  }
  0x31   : > { %518 = vrot.lane.b32.xlu1 %v2224_v61, %s1867_s30 }
  0x32   : > { %516 = vrot.lane.b32.xlu0 %v2208_v54, %s1867_s30 }
  0x33   : > { %1760 = vmatpush3.bf16.msra.mxu1 %v1759_v15 }
  0x34   : > { %1762 = vmatprep.subr.bf16.mxu1 %v1761_v26 }
  0x37   : > { %1764 = vmatpush3.bf16.msra.mxu1 %v1763_v46 }
  0x38   : > { %1766 = vmatprep.subr.bf16.mxu1 %v1765_v47 }
  0x3b   : > { %1768 = vmatpush3.bf16.msra.mxu1 %v1767_v56 }
  0x3c   : > { %1770 = vmatprep.subr.bf16.mxu1 %v1769_v58 }
  0x7b   : > { %v446_v10 = vpop.permute.xlu1 %445 }
  0x7d   : > { %v411_v7 = vpop.permute.xlu0 %410 }
  0x7f   : > { %v448_v33 = vpop.permute.xlu1 %447 }
  0x80   : > { %v449_v37 = vsel %vm442_vm1, %v446_v10, %v448_v33  ;;  %v450_v50 = vsel %vm442_vm1, %v448_v33, %v446_v10 }
  0x81   : > { %v413_v20 = vpop.permute.xlu0 %412  ;;  %v451_v57 = vsub.s32 %v449_v37, %v1969_v13  ;;  %v452_v59 = vsub.s32 %v450_v50, %v2012_v32  ;;  %v1779_v37 = vpack.c.bf16 %v960_v31, %v959_v30 }
  0x82   : > { %v415_v25 = vsel %vm407_vm0, %v413_v20, %v411_v7  ;;  %v414_v34 = vsel %vm407_vm0, %v411_v7, %v413_v20  ;;  %v957_v7 = vld [vmem:[%s2646_s6 + $0x60] sm:$0xff] }
  0x83   : > { %v416_v44 = vsub.s32 %v415_v25, %v1969_v13  ;;  %v417_v51 = vsub.s32 %v414_v34, %v2012_v32  ;;  %v1771_v32 = vpack.c.bf16 %v956_v1, %v955_v0  ;;  %vm453_vm7 = vcmp.eq.s32.totalorder %v451_v57, 16 }
  0x84   : > { %vm455_vm8 = vcmp.eq.s32.totalorder %v451_v57, 4294967280  ;;  %vm454_vm10 = vcmp.eq.s32.totalorder %v452_v59, 16  ;;  %vm456_vm11 = vcmp.eq.s32.totalorder %v452_v59, 4294967280  ;;  %v1775_v9 = vpack.c.bf16 %v958_v8, %v957_v7 }
  0x85   : > { %vm418_vm2 = vcmp.eq.s32.totalorder %v416_v44, 16  ;;  %vm420_vm3 = vcmp.eq.s32.totalorder %v416_v44, 4294967280  ;;  %vm419_vm5 = vcmp.eq.s32.totalorder %v417_v51, 16  ;;  %vm421_vm6 = vcmp.eq.s32.totalorder %v417_v51, 4294967280  ;;  %vm457_vm14 = vmor %vm453_vm7, %vm455_vm8  ;;  %1772 = vmatpush3.bf16.msra.mxu1 %v1771_v32 }
  0x86   : > { %vm2337_vm9 = vmor %vm418_vm2, %vm420_vm3  ;;  %1774 = vmatprep.subr.bf16.mxu1 %v1773_v6  ;;  %vm520_vm2 = vcmp.lt.s32.totalorder %v1969_v13, 127  ;;  %v459_v23 = vsel %vm457_vm14, 1, %v1871_v11  ;;  %v611_v51 = vmul.f32 0.105, %v2146_v28 }
  0x87   : > { %vm423_vm12 = vmor %vm419_vm5, %vm421_vm6  ;;  %v424_v12 = vsel %vm2337_vm9, 1, %v1871_v11  ;;  %v464_v47 = vrot.slane %v459_v23, %v2141_v24 }
  0x88   : > { %vm2354_vm15 = vmor %vm454_vm10, %vm456_vm11  ;;  %v425_v14 = vsel %vm423_vm12, 1, %v1871_v11  ;;  %v429_v34 = vrot.slane %v424_v12, %v2141_v24 }
  0x89   : > { %v460_v33 = vsel %vm2354_vm15, 1, %v1871_v11  ;;  %v433_v36 = vrot.slane %v425_v14, %v2141_v24  ;;  %1776 = vmatpush3.bf16.msra.mxu1 %v1775_v9 }
  0x8a   : > { %1778 = vmatprep.subr.bf16.mxu1 %v1777_v27  ;;  %v468_v48 = vrot.slane %v460_v33, %v2141_v24  ;;  %vm2397_vm10 = vcmp.eq.s32.totalorder %v429_v34, 1 }
  0x8b   : > { %vm2401_vm11 = vcmp.eq.s32.totalorder %v433_v36, 1 }
  0x8d   : > { %1780 = vmatpush3.bf16.msra.mxu1 %v1779_v37  ;;  %v603_v37 = vmul.f32 %v601_v22, %v2146_v28 }
  0x8e   : > { %1813 = vmatprep.subr.bf16.mxu1 %v1868_v35 }
  0x8f   : > { %v491_v15 = vpop.permute.xlu1 %490 }
  0x90   : > { %v489_v18 = vpop.permute.xlu0 %488 }
  0x91   : > { %v492_v19 = vsel %vm477_vm13, %v489_v18, %v491_v15  ;;  %v493_v20 = vsel %vm477_vm13, %v491_v15, %v489_v18 }
  0x92   : > { %v494_v25 = vsub.s32 %v493_v20, %v2179_v41  ;;  %v495_v26 = vsub.s32 %v492_v19, %v2176_v40 }
  0x93   : > { %v526_v38 = vpop.permute.xlu1 %525 }
  0x94   : > { %vm496_vm3 = vcmp.eq.s32.totalorder %v494_v25, 1  ;;  %vm497_vm5 = vcmp.eq.s32.totalorder %v495_v26, 1  ;;  %vm498_vm6 = vcmp.eq.s32.totalorder %v494_v25, 4294967295  ;;  %vm499_vm7 = vcmp.eq.s32.totalorder %v495_v26, 4294967295  ;;  %v524_v39 = vpop.permute.xlu0 %523 }
  0x95   : > { %vm500_vm8 = vmor %vm496_vm3, %vm498_vm6  ;;  %v527_v42 = vsel %vm520_vm2, %v524_v39, %v526_v38  ;;  %v528_v44 = vsel %vm520_vm2, %v526_v38, %v524_v39 }
  0x96   : > { %vm501_vm9 = vmor %vm497_vm5, %vm499_vm7  ;;  %v529_v45 = vsub.s32 %v527_v42, %v2179_v41  ;;  %v530_v46 = vsub.s32 %v528_v44, %v2176_v40  ;;  %v502_v49 = vsel %vm500_vm8, 1, %v1871_v11  ;;  %vm469_vm7 = vcmp.eq.s32.totalorder %v464_v47, 1 }
  0x97   : > { %v503_v50 = vsel %vm501_vm9, 1, %v1871_v11  ;;  %v406_v41 = vpop.permute.xlu1 %405  ;;  %v507_v58 = vrot.slane %v502_v49, %v2141_v24  ;;  %vm470_vm8 = vcmp.eq.s32.totalorder %v468_v48, 1 }
  0x98   : > { %vm531_vm12 = vcmp.eq.s32.totalorder %v529_v45, 1  ;;  %vm532_vm14 = vcmp.eq.s32.totalorder %v530_v46, 1  ;;  %vm533_vm15 = vcmp.eq.s32.totalorder %v529_v45, 4294967295  ;;  %vm534_vm3 = vcmp.eq.s32.totalorder %v530_v46, 4294967295  ;;  %v404_v40 = vpop.permute.xlu0 %403 }
  0x99   : > { %vm535_vm5 = vmor %vm531_vm12, %vm533_vm15  ;;  %v408_v53 = vsel %vm407_vm0, %v404_v40, %v406_v41  ;;  %v409_v55 = vsel %vm407_vm0, %v406_v41, %v404_v40  ;;  %v511_v59 = vrot.slane %v503_v50, %v2141_v24  ;;  %vm512_vm0 = vcmp.eq.s32.totalorder %v507_v58, 1 }
  0x9a   : > { %vm536_vm6 = vmor %vm532_vm14, %vm534_vm3  ;;  %v436_v56 = vsel %vm2397_vm10, %v409_v55, %v2208_v54  ;;  %v437_v57 = vsel %vm2401_vm11, %v408_v53, %v2224_v61  ;;  %v537_v32 = vsel %vm535_vm5, 1, %v1871_v11  ;;  %v604_v46 = vmul.f32 %v603_v37, %v601_v22  ;;  %v724_v53 = vld [vmem:[%s2643_s3] sm:$0x1]  ;;  %v1004_v37 = vld [vmem:[%s2646_s6 + $0x1d8] sm:$0xff] }
  0x9b   : > { %v554_v0 = vcombine.low %v436_v56, %v437_v57  ;;  %v538_v2 = vsel %vm536_vm6, 1, %v1871_v11  ;;  %v441_v4 = vpop.permute.xlu1 %440  ;;  %vm513_vm9 = vcmp.eq.s32.totalorder %v511_v59, 1  ;;  %v542_v11 = vrot.slane %v537_v32, %v2141_v24  ;;  %v977_v32 = vld [vmem:[%s2646_s6 + $0x100] sm:$0xff] }
  0x9c   : > { %v439_v1 = vpop.permute.xlu0 %438  ;;  %v546_v15 = vrot.slane %v538_v2, %v2141_v24  ;;  %v1497_v49 = vrot.slane %v604_v46, 9  ;;  %v978_v2 = vld [vmem:[%s2646_s6 + $0x108] sm:$0xff] }
  0x9d   : > { %v561_v5 = vrot.slane %v554_v0, %v2182_v43  ;;  %v443_v6 = vsel %vm442_vm1, %v439_v1, %v441_v4  ;;  %v444_v7 = vsel %vm442_vm1, %v441_v4, %v439_v1  ;;  %vm547_vm1 = vcmp.eq.s32.totalorder %v542_v11, 1  ;;  %v995_v4 = vld [vmem:[%s2646_s6 + $0x190] sm:$0xff] }
  0x9e   : > { %v471_v8 = vsel %vm469_vm7, %v443_v6, %v2208_v54  ;;  %v472_v9 = vsel %vm470_vm8, %v444_v7, %v2224_v61  ;;  %vm548_vm10 = vcmp.eq.s32.totalorder %v546_v15, 1  ;;  %v981_v15 = vld [vmem:[%s2646_s6 + $0x120] sm:$0xff] }
  0x9f   : > { %v563_v10 = vsub.f32 %v551_v62, %v561_v5  ;;  %v566_v12 = vcombine.low %v471_v8, %v472_v9  ;;  %v476_v18 = vpop.permute.xlu1 %475  ;;  %v1783_v5 = vpack.c.bf16 %v978_v2, %v977_v32  ;;  %v979_v8 = vld [vmem:[%s2646_s6 + $0x110] sm:$0xff]  ;;  %v980_v9 = vld [vmem:[%s2646_s6 + $0x118] sm:$0xff] }
  0xa0   : > { %v474_v14 = vpop.permute.xlu0 %473 }
  0xa1   : > { %v573_v19 = vrot.slane %v566_v12, %v2182_v43  ;;  %v478_v20 = vsel %vm477_vm13, %v474_v14, %v476_v18  ;;  %v479_v21 = vsel %vm477_vm13, %v476_v18, %v474_v14  ;;  %v997_v12 = vld [vmem:[%s2646_s6 + $0x1a0] sm:$0xff]  ;;  %v998_v14 = vld [vmem:[%s2646_s6 + $0x1a8] sm:$0xff]  ;;  %vm1410_vm13 = vcmp.lt.s32.totalorder %v389_v3, 256 }
  0xa2   : > { %v514_v23 = vsel %vm512_vm0, %v479_v21, %v2208_v54  ;;  %v515_v25 = vsel %vm513_vm9, %v478_v20, %v2224_v61  ;;  %v1789_v11 = vpack.c.bf16 %v998_v14, %v997_v12  ;;  %v982_v18 = vld [vmem:[%s2646_s6 + $0x128] sm:$0xff]  ;;  %v1000_v20 = vld [vmem:[%s2646_s6 + $0x1b8] sm:$0xff]  ;;  %v1235_v12 = vld [vmem:[%s2650_s10 + $0x30] sm:$0xff] }
  0xa3   : > { %v575_v26 = vsub.f32 %v563_v10, %v573_v19  ;;  %v578_v27 = vcombine.low %v514_v23, %v515_v25  ;;  %v519_v31 = vpop.permute.xlu1 %518  ;;  %v999_v19 = vld [vmem:[%s2646_s6 + $0x1b0] sm:$0xff]  ;;  %v1791_v21 = vpack.c.bf16 %v982_v18, %v981_v15  ;;  %v984_v25 = vld [vmem:[%s2646_s6 + $0x138] sm:$0xff] }
  0xa4   : > { %v517_v30 = vpop.permute.xlu0 %516  ;;  %v1793_v22 = vpack.c.bf16 %v1000_v20, %v999_v19  ;;  %v983_v23 = vld [vmem:[%s2646_s6 + $0x130] sm:$0xff]  ;;  %v1238_v19 = vld [vmem:[%s2650_s10 + $0x48] sm:$0xff] }
  0xa5   : > { %v585_v33 = vrot.slane %v578_v27, %v2182_v43  ;;  %v521_v34 = vsel %vm520_vm2, %v517_v30, %v519_v31  ;;  %v522_v36 = vsel %vm520_vm2, %v519_v31, %v517_v30  ;;  %v1002_v27 = vld [vmem:[%s2646_s6 + $0x1c8] sm:$0xff]  ;;  %v1795_v30 = vpack.c.bf16 %v984_v25, %v983_v23  ;;  %v1244_v23 = vld [vmem:[%s2650_s10 + $0x78] sm:$0xff]  ;;  %v1241_v25 = vld [vmem:[%s2650_s10 + $0x60] sm:$0xff] }
  0xa6   : > { %v549_v38 = vsel %vm547_vm1, %v521_v34, %v2208_v54  ;;  %v550_v39 = vsel %vm548_vm10, %v522_v36, %v2224_v61  ;;  %v986_v34 = vld [vmem:[%s2646_s6 + $0x148] sm:$0xff]  ;;  %v1003_v36 = vld [vmem:[%s2646_s6 + $0x1d0] sm:$0xff] }
  0xa7   : > { %v587_v42 = vsub.f32 %v575_v26, %v585_v33  ;;  %v590_v44 = vcombine.low %v549_v38, %v550_v39  ;;  %v1001_v26 = vld [vmem:[%s2646_s6 + $0x1c0] sm:$0xff]  ;;  %v1801_v39 = vpack.c.bf16 %v1004_v37, %v1003_v36  ;;  %v1242_v20 = vld [vmem:[%s2650_s10 + $0x68] sm:$0xff] }
  0xa8   : > { %v1797_v31 = vpack.c.bf16 %v1002_v27, %v1001_v26  ;;  %v985_v33 = vld [vmem:[%s2646_s6 + $0x140] sm:$0xff] }
  0xa9   : > { %v597_v45 = vrot.slane %v590_v44, %v2182_v43  ;;  %v1799_v38 = vpack.c.bf16 %v986_v34, %v985_v33  ;;  %v988_v44 = vld [vmem:[%s2646_s6 + $0x158] sm:$0xff]  ;;  %v870_v34 = vld [vmem:[%s2645_s5] sm:$0x1] }
  0xaa   : > { %v1154_v36 = vld [vmem:[%s2649_s9] sm:$0x1] }
  0xab   : > { %v599_v47 = vsub.f32 %v587_v42, %v597_v45  ;;  %v987_v42 = vld [vmem:[%s2646_s6 + $0x150] sm:$0xff]  ;;  %v1005_v45 = vld [vmem:[%s2646_s6 + $0x1e0] sm:$0xff] }
  0xad   : > { %v600_v48 = vmul.f32 3844.0, %v599_v47  ;;  %v1803_v47 = vpack.c.bf16 %v988_v44, %v987_v42 }
  0xaf   : > { %v605_v50 = vmul.f32 0.00025, %v600_v48  ;;  %v613_v52 = vmul.f32 0.0005, %v600_v48 }
  0xb1   : > { %v610_v13 = vsub.f32 %v605_v50, %v1497_v49  ;;  %v614_v40 = vadd.f32 %v613_v52, %v604_v46  ;;  %v1006_v46 = vld [vmem:[%s2646_s6 + $0x1e8] sm:$0xff]  ;;  %v989_v49 = vld [vmem:[%s2646_s6 + $0x160] sm:$0xff]  ;;  %v1008_v52 = vld [vmem:[%s2646_s6 + $0x1f8] sm:$0xff] }
  0xb2   : > { %v1805_v48 = vpack.c.bf16 %v1006_v46, %v1005_v45  ;;  %v990_v50 = vld [vmem:[%s2646_s6 + $0x168] sm:$0xff]  ;;  %v1872_v45 = vmov 1966171168  }
  0xb3   : > { %v612_v41 = vadd.f32 %v611_v51, %v610_v13  ;;  %v1007_v51 = vld [vmem:[%s2646_s6 + $0x1f0] sm:$0xff]  ;;  %v1807_v13 = vpack.c.bf16 %v990_v50, %v989_v49  ;;  %v1394_v46 = vunpack.c.l.s4 %v1872_v45 }
  0xb5   : > { %v646_v54 = vrot.slane %v612_v41, %v624_v16  ;;  %v642_v61 = vrot.slane %v612_v41, %v2141_v24  ;;  %v615_v16 = vsub.f32 1.0, %v2146_v28  ;;  %v996_v28 = vld [vmem:[%s2646_s6 + $0x198] sm:$0xff]  ;;  %v991_v41 = vld [vmem:[%s2646_s6 + $0x170] sm:$0xff] }
  0xb6   : > { %v1785_v7 = vpack.c.bf16 %v996_v28, %v995_v4 }
  0xb7   : > { %1074 = vmatprep.mubr.f32.mxu1 %v646_v54  ;;  %v616_v24 = vmul.f32 0.04, %v615_v16  ;;  %v992_v54 = vld [vmem:[%s2646_s6 + $0x178] sm:$0xff] }
  0xb8   : > { %1075 = vmatmul.mubr.f32.vlgmr.msra.gmra.mrb[2].mxu1 %v642_v61  ;;  %v1811_v61 = vpack.c.bf16 %v992_v54, %v991_v41 }
  0xb9   : > { %1676 = vmatprep.mubr.msk.f32.mxu1 %vm1869_vm4, %v1870_v60  ;;  %v2457_v1 = vsub.f32 %v614_v40, %v616_v24  ;;  %vm871_vm4 = vcmask 261120   ;;  %v1809_v40 = vpack.c.bf16 %v1008_v52, %v1007_v51  ;;  %v1229_v24 = vld [vmem:[%s2650_s10] sm:$0xff] }
  0xbb   : > { %v657_v6 = vrot.slane %v2457_v1, %v634_v17  ;;  %v1787_v17 = vpack.c.bf16 %v980_v9, %v979_v8  ;;  %v1009_v8 = vld [vmem:[%s2647_s7] sm:$0x1] }
  0xfb   : > { %v1539_v43 = vpop.f32.mrb[0].mxu0 }
  0xfc   : > { %v1540_v55 = vpop.f32.mrb[1].mxu0 }
  0xfd   : > { %v1574_v56 = vpop.f32.mrb[0].mxu1  ;;  %v1541_v57 = vadd.f32 %v1540_v55, %v1539_v43  ;;  %v653_v43 = vrot.slane %v2457_v1, %v2149_v29  ;;  %v1151_v55 = vld [vmem:[%s2648_s8 + $0x8] sm:$0xff]  ;;  %v1153_v29 = vld [vmem:[%s2648_s8 + $0x18] sm:$0xff]  ;;  %v1233_v1 = vld [vmem:[%s2650_s10 + $0x20] sm:$0xff] }
  0xfe   : > { %v1575_v58 = vpop.f32.mrb[1].mxu1  ;;  %v1821_v2 = vpack.c.bf16 %v1233_v1, %v1229_v24 }
  0xff   : > { %v1576_v59 = vadd.f32 %v1575_v58, %v1574_v56  ;;  %v792_v62 = vadd.f32 %v1541_v57, %v724_v53  ;;  %v1150_v53 = vld [vmem:[%s2648_s8] sm:$0xff]  ;;  %v1152_v57 = vld [vmem:[%s2648_s8 + $0x10] sm:$0xff] }
 0x100   : > { %v1814_v56 = vpack.c.bf16 %v1151_v55, %v1150_v53  ;;  %v1817_v58 = vpack.c.bf16 %v1153_v29, %v1152_v57 }
 0x101   : > { %v862_v0 = vadd.f32 %v1576_v59, %v792_v62  ;;  %v1230_v59 = vld [vmem:[%s2650_s10 + $0x8] sm:$0xff] }
 0x102   : > { %1815 = vmatpush3.bf16.msra.mxu1 %v1814_v56  ;;  %v1234_v62 = vld [vmem:[%s2650_s10 + $0x28] sm:$0xff] }
 0x103   : > { %1853 = vtanh.f32 %v862_v0  ;;  %1816 = vmatprep.subr.bf16.mxu1 %v1868_v35  ;;  %v1232_v35 = vld [vmem:[%s2650_s10 + $0x18] sm:$0xff]  ;;  %v1819_v16 = vpack.c.bf16 %v1234_v62, %v1230_v59 }
 0x104   : > { %v1236_v0 = vld [vmem:[%s2650_s10 + $0x38] sm:$0xff] }
 0x105   : > { %v1827_v32 = vpack.c.bf16 %v1236_v0, %v1232_v35 }
 0x106   : > { %1818 = vmatpush3.bf16.msra.mxu1 %v1817_v58 }
 0x107   : > { %1828 = vmatprep.subr.bf16.mxu1 %v1827_v32 }
 0x10d   : > { %v1854_v10 = vpop.eup %1853 }
 0x10e   : > { %1666 = vmatmul.mubr.msk.f32.vlgmr.msra.gmra.mrb[2].mxu0 %vm871_vm4, %v1854_v10  ;;  %v1231_v10 = vld [vmem:[%s2650_s10 + $0x10] sm:$0xff] }
 0x10f   : > { %1784 = vmatpush3.bf16.msra.mxu0 %v1783_v5  ;;  %1144 = vmatprep.mubr.f32.mxu0 %v657_v6  ;;  %v1829_v15 = vpack.c.bf16 %v1235_v12, %v1231_v10 }
 0x110   : > { %1786 = vmatprep.subr.bf16.mxu0 %v1785_v7 }
 0x113   : > { %1788 = vmatpush3.bf16.msra.mxu0 %v1787_v17 }
 0x114   : > { %1790 = vmatprep.subr.bf16.mxu0 %v1789_v11 }
 0x117   : > { %1792 = vmatpush3.bf16.msra.mxu0 %v1791_v21  ;;  %v1240_v21 = vld [vmem:[%s2650_s10 + $0x58] sm:$0xff] }
 0x118   : > { %1794 = vmatprep.subr.bf16.mxu0 %v1793_v22  ;;  %v1823_v22 = vpack.c.bf16 %v1242_v20, %v1238_v19  ;;  %v1831_v26 = vpack.c.bf16 %v1244_v23, %v1240_v21 }
 0x11b   : > { %1796 = vmatpush3.bf16.msra.mxu0 %v1795_v30  ;;  %v1239_v30 = vld [vmem:[%s2650_s10 + $0x50] sm:$0xff] }
 0x11c   : > { %1798 = vmatprep.subr.bf16.mxu0 %v1797_v31  ;;  %v1243_v31 = vld [vmem:[%s2650_s10 + $0x70] sm:$0xff] }
 0x11d   : > { %v1833_v33 = vpack.c.bf16 %v1243_v31, %v1239_v30 }
 0x11f   : > { %1800 = vmatpush3.bf16.msra.mxu0 %v1799_v38 }
 0x120   : > { %1802 = vmatprep.subr.bf16.mxu0 %v1801_v39 }
 0x123   : > { %1804 = vmatpush3.bf16.msra.mxu0 %v1803_v47  ;;  %v1395_v47 = vunpack.c.0.s8 %v1394_v46 }
 0x124   : > { %1806 = vmatprep.subr.bf16.mxu0 %v1805_v48 }
 0x125   : > { %v1398_v50 = vsub.s32 %v1395_v47, %v2094_v63 }
 0x127   : > { %1808 = vmatpush3.bf16.msra.mxu0 %v1807_v13 }
 0x128   : > { %1810 = vmatprep.subr.bf16.mxu0 %v1809_v40 }
 0x12b   : > { %1812 = vmatpush3.bf16.msra.mxu0 %v1811_v61 }
 0x12c   : > { %1820 = vmatprep.subr.bf16.mxu0 %v1819_v16 }
 0x12e   : > { %1145 = vmatmul.mubr.f32.vlgmr.msra.gmra.mrb[4].mxu0 %v653_v43 }
 0x12f   : > { %1312 = vmatprep.mubr.f32.mxu0 %v1870_v60  ;;  %1822 = vmatpush1.bf16.msra.mxu0 %v1821_v2 }
 0x130   : > { %1824 = vmatprep.subr.bf16.mxu0 %v1823_v22 }
 0x18b   : > { %v1614_v4 = vpop.f32.mrb[2].mxu1 }
 0x18c   : > { %v1615_v28 = vpop.f32.mrb[3].mxu1 }
 0x18d   : > { %v1616_v5 = vadd.f32 %v1615_v28, %v1614_v4 }
 0x18f   : > { %v1077_v17 = vadd.f32 %v1616_v5, %v1009_v8 }
 0x1e1   : > { %v941_v6 = vpop.f32.mrb[2].mxu0 }
 0x1e2   : > { %v1667_v7 = vpop.f32.mrb[3].mxu0  ;;  %v942_v38 = vadd.f32 %v941_v6, %v870_v34 }
 0x201   : > { %v1649_v9 = vpop.f32.mrb[4].mxu0 }
 0x202   : > { %v1650_v14 = vpop.f32.mrb[5].mxu0 }
 0x203   : > { %v1651_v11 = vadd.f32 %v1650_v14, %v1649_v9 }
 0x205   : > { %v1147_v18 = vadd.f32 %v1651_v11, %v1077_v17 }
 0x207   : > { %1677 = vmatmul.mubr.msk.f32.vlgmr.msra.gmra.mrb[4].mxu1 %vm871_vm4, %v1147_v18 }
 0x208   : > { %1830 = vmatpush1.bf16.msra.mxu1 %v1829_v15  ;;  %1383 = vmatprep.mubr.f32.mxu1 %v1870_v60  ;;  %v1237_v60 = vld [vmem:[%s2650_s10 + $0x40] sm:$0xff] }
 0x209   : > { %v1825_v27 = vpack.c.bf16 %v1241_v25, %v1237_v60  ;;  %1832 = vmatprep.subr.bf16.mxu1 %v1831_v26 }
 0x20b   : > { %1826 = vmatpush1.bf16.msra.mxu0 %v1825_v27 }
 0x20c   : > { %1834 = vmatpush1.bf16.msra.mxu1 %v1833_v33 }
 0x2da   : > { %v1224_v37 = vpop.f32.mrb[4].mxu1 }
 0x2db   : > { %v1225_v39 = vadd.f32 %v1224_v37, %v1154_v36  ;;  %v1678_v42 = vpop.f32.mrb[5].mxu1 }
 0x2dd   : > { %v1228_v44 = vmul.f32 %v1225_v39, %v942_v38 }
 0x2df   : > { %1500 = vmatmul.mubr.msk.f32.vlgmr.msra.gmra.mrb[6].mxu0 %vm871_vm4, %v1228_v44  ;;  %1501 = vmatmul.mubr.msk.f32.vlgmr.msra.gmra.mrb[6].mxu1 %vm871_vm4, %v1228_v44 }
 0x3b2   : > { %v1314_v48 = vpop.f32.mrb[6].mxu0  ;;  %v1385_v49 = vpop.f32.mrb[6].mxu1 }
 0x3b3   : > { %v1316_v51 = vpop.f32.mrb[7].mxu0  ;;  %v1387_v52 = vpop.f32.mrb[7].mxu1 }
 0x3b4   : > { %v1392_v13 = vcombine.low %v1314_v48, %v1316_v51  ;;  %v1415_v40 = vcombine.low %v1385_v49, %v1387_v52 }
 0x3b6   : > { %v1399_v41 = vrot.slane %v1392_v13, %v1398_v50  ;;  %v1422_v54 = vrot.slane %v1415_v40, %v1398_v50 }
 0x3b8   : > { %v1406_v61 = vrot.slane %v1399_v41, %v1398_v50  ;;  %v1429_v43 = vrot.slane %v1422_v54, %v1398_v50 }
 0x3ba   : > { %1412 = vst.msk [vmem:[%s386_s28] ss:$2 sm:$0x3] %vm1410_vm13, %v1406_v61  ;;  %1502 = vst.msk [vmem:[%s386_s28 + $0x1] ss:$2 sm:$0x3] %vm1410_vm13, %v1429_v43 }
 0x3bb PF: > { %s21_s17 = sadd.s32 1, %s1861_s17  }
 0x3bc   : > { %p18_p4 = scmp.ge.s32.totalorder %s21_s17, 4  }
 0x3be   :  { %20 = sbr.rel (!%p18_p4) target bundleno = 1 (0x1), region = 95 }

</bundles_post_ra>
